<compile_context>
chip_gen: v5e
topology: v5e:2x2
jax: 0.10.0
libtpu: 0.0.40
codegen_flags: <defaults>
</compile_context>

<pallas_src>
import jax
import jax.numpy as jnp
from jax.experimental import pallas as pl
from jax.experimental.pallas import tpu as pltpu

_LANE = 128
_SUBLANE = 8


def _make_kernel(TB, C, HW_lanes, inv_denom):
    def kernel(ref_ref, gen_ref, bnd_ref, out_ref):
        # ref_ref/gen_ref: (TB, C*HW_lanes) tiles, input dtype
        # bnd_ref:         (1,  C*HW_lanes) predecessor of the block's row 0
        # out_ref:         (TB, 1) f32
        ref = ref_ref[...].astype(jnp.float32)
        gen = gen_ref[...].astype(jnp.float32)
        bnd = bnd_ref[...].astype(jnp.float32)

        # prev[i] = ref[i-1] for i >= 1, boundary frame for i == 0.
        if TB > 1:
            rolled = pltpu.roll(ref, shift=1, axis=0)            # XLU sublane rotate
            row = jax.lax.broadcasted_iota(jnp.int32, ref.shape, 0)
            prev = jnp.where(row == 0, jnp.broadcast_to(bnd, ref.shape), rolled)
        else:
            prev = bnd

        d = ref - prev
        sq = d * d                       # per-channel squared frame difference
        e = ref - gen
        esq = e * e                      # per-channel squared error

        # Channel sums via static, 128-aligned lane slices (pure VPU adds).
        mask = sq[:, 0:HW_lanes]
        err = esq[:, 0:HW_lanes]
        for c in range(1, C):
            lo = c * HW_lanes
            mask = mask + sq[:, lo:lo + HW_lanes]
            err = err + esq[:, lo:lo + HW_lanes]

        # mean_{c,h,w}((ref-gen)^2 * mask) == sum_hw(mask * sum_c err) / (C*H*W)
        out_ref[...] = jnp.sum(mask * err, axis=-1, keepdims=True) * inv_denom

    return kernel


def motion_masked_mse(reference_observations, generated_observations):
    """
    :param reference_observations: (bs, T, C, H, W)
    :param generated_observations: (bs, T, C, H, W)
    :return: (bs, T) f32 motion-masked MSE per observation
    """
    bs, T, C, H, W = reference_observations.shape
    assert generated_observations.shape == reference_observations.shape

    HW = H * W
    itemsize = reference_observations.dtype.itemsize

    # Lane-dense (bs, T, C*HW) layout. Only pad H*W to a lane multiple when
    # required (zeros contribute 0 to both mask and error; denominator stays
    # the true C*H*W).  TODO(synk): padded path costs one extra HBM pass.
    if HW % _LANE == 0:
        HW_lanes = HW
        ref_f = reference_observations.reshape(bs, T, C * HW)
        gen_f = generated_observations.reshape(bs, T, C * HW)
    else:
        HW_lanes = ((HW + _LANE - 1) // _LANE) * _LANE
        pad = ((0, 0), (0, 0), (0, 0), (0, HW_lanes - HW))
        ref_f = jnp.pad(reference_observations.reshape(bs, T, C, HW), pad
                        ).reshape(bs, T, C * HW_lanes)
        gen_f = jnp.pad(generated_observations.reshape(bs, T, C, HW), pad
                        ).reshape(bs, T, C * HW_lanes)
    CHW = C * HW_lanes

    # Per-generation VMEM budget: 64 MiB scoped on 128 MiB chips (v5e/v6e),
    # 48 MiB on v7x's 64 MiB physical VMEM.
    try:
        vmem_cap = pltpu.get_tpu_info().vmem_capacity_bytes
    except Exception:  # interpret mode / older runtimes
        vmem_cap = 64 * 1024 * 1024
    vmem_limit = int(min(64 * 1024 * 1024, (vmem_cap * 3) // 4))

    # Temporal tile: whole sequence if it fits, else the largest multiple-of-8
    # tile whose working set (2 inputs x 2 pipeline buffers in the input dtype
    # + ~3 f32 temporaries) stays under ~60% of the scoped limit.
    bytes_per_frame = CHW * itemsize
    per_frame_cost = 4 * bytes_per_frame + 3 * CHW * 4
    tb_max = max(1, int(0.6 * vmem_limit) // per_frame_cost)
    if T <= tb_max:
        TB = T
    else:
        TB = max(_SUBLANE, (tb_max // _SUBLANE) * _SUBLANE)
    nT = pl.cdiv(T, TB)

    # Boundary frames: predecessor of each block's first row (frame 0 is its
    # own predecessor -> zero mask at t=0). One frame per block, gathered in
    # the wrapper -> no carry scratch, no sequential temporal dependence.
    bnd_idx = jnp.maximum(jnp.arange(nT, dtype=jnp.int32) * TB - 1, 0)
    bnd = jnp.take(ref_f, bnd_idx, axis=1)[:, :, None, :]      # (bs, nT, 1, CHW)

    inv_denom = 1.0 / float(C * H * W)
    kernel = _make_kernel(TB, C, HW_lanes, inv_denom)

    in_spec = pl.BlockSpec((None, TB, CHW), lambda b, t: (b, t, 0))
    bnd_spec = pl.BlockSpec((None, None, 1, CHW), lambda b, t: (b, t, 0, 0))
    out_spec = pl.BlockSpec((None, TB, 1), lambda b, t: (b, t, 0))

    cost = pl.CostEstimate(
        flops=6 * bs * T * CHW,
        transcendentals=0,
        bytes_accessed=2 * bs * T * CHW * itemsize
        + bs * nT * CHW * itemsize
        + bs * T * 4,
    )

    out = pl.pallas_call(
        kernel,
        out_shape=jax.ShapeDtypeStruct((bs, T, 1), jnp.float32),
        grid_spec=pltpu.PrefetchScalarGridSpec(
            num_scalar_prefetch=0,
            grid=(bs, nT),
            in_specs=[in_spec, in_spec, bnd_spec],
            out_specs=out_spec,
        ),
        compiler_params=pltpu.CompilerParams(
            dimension_semantics=("parallel", "parallel"),
            vmem_limit_bytes=vmem_limit,
        ),
        cost_estimate=cost,
    )(ref_f, gen_f, bnd)

    return out[:, :, 0]


def _reference_impl(ref, gen):
    """Pure-JAX reference with the same reconstructed motion-mask semantics."""
    prev = jnp.concatenate([ref[:, :1], ref[:, :-1]], axis=1)
    mask = jnp.sum((ref - prev) ** 2, axis=2, keepdims=True)
    diff = (ref - gen) ** 2 * mask
    return jnp.mean(diff, axis=(2, 3, 4))


if __name__ == "__main__":
    key = jax.random.PRNGKey(0)
    k1, k2 = jax.random.split(key)

    bs, T, C, H, W = 2, 8, 3, 16, 16
    reference = jax.random.uniform(k1, (bs, T, C, H, W), dtype=jnp.float32)
    generated = jax.random.uniform(k2, (bs, T, C, H, W), dtype=jnp.float32)

    result = motion_masked_mse(reference, generated)
    jax.block_until_ready(result)

    assert result.shape == (bs, T), result.shape
    assert result.dtype == jnp.float32

    expected = _reference_impl(reference.astype(jnp.float32),
                               generated.astype(jnp.float32))
    assert jnp.allclose(result, expected, rtol=1e-4, atol=1e-6), (
        jnp.max(jnp.abs(result - expected)))

    print("KERNEL_OK")
</pallas_src>

<mosaic_0001>
module attributes {stable_mosaic.version = 11 : i64} {
  func.func @kernel(%arg0: i32, %arg1: i32, %arg2: memref<1x8x768xf32, #tpu.memory_space<vmem>>, %arg3: memref<1x8x768xf32, #tpu.memory_space<vmem>>, %arg4: memref<1x1x1x768xf32, #tpu.memory_space<vmem>>, %arg5: memref<1x8x1xf32, #tpu.memory_space<vmem>>) attributes {dimension_semantics = [#tpu.dimension_semantics<parallel>, #tpu.dimension_semantics<parallel>], iteration_bounds = array<i64: 2, 1>, scalar_prefetch = 0 : i64, scratch_operands = 0 : i64, tpu.core_type = #tpu.core_type<tc>, window_params = [{transform_indices = @transform_0, window_bounds = array<i64: 1, 8, 768>}, {transform_indices = @transform_1, window_bounds = array<i64: 1, 8, 768>}, {transform_indices = @transform_2, window_bounds = array<i64: 1, 1, 1, 768>}, {transform_indices = @transform_3, window_bounds = array<i64: 1, 8, 1>}]} {
    %c0 = arith.constant 0 : index
    %c0_0 = arith.constant 0 : index
    %c0_1 = arith.constant 0 : index
    %0 = vector.load %arg2[%c0, %c0_0, %c0_1] : memref<1x8x768xf32, #tpu.memory_space<vmem>>, vector<1x8x768xf32>
    %1 = vector.shape_cast %0 : vector<1x8x768xf32> to vector<8x768xf32>
    %c0_2 = arith.constant 0 : index
    %c0_3 = arith.constant 0 : index
    %c0_4 = arith.constant 0 : index
    %2 = vector.load %arg3[%c0_2, %c0_3, %c0_4] : memref<1x8x768xf32, #tpu.memory_space<vmem>>, vector<1x8x768xf32>
    %3 = vector.shape_cast %2 : vector<1x8x768xf32> to vector<8x768xf32>
    %c0_5 = arith.constant 0 : index
    %c0_6 = arith.constant 0 : index
    %c0_7 = arith.constant 0 : index
    %c0_8 = arith.constant 0 : index
    %4 = vector.load %arg4[%c0_5, %c0_6, %c0_7, %c0_8] : memref<1x1x1x768xf32, #tpu.memory_space<vmem>>, vector<1x1x1x768xf32>
    %5 = vector.shape_cast %4 : vector<1x1x1x768xf32> to vector<1x768xf32>
    %c1_i32 = arith.constant 1 : i32
    %6 = tpu.dynamic_rotate %1 by %c1_i32 dim 0 : vector<8x768xf32>, i32 -> vector<8x768xf32>
    %7 = tpu.iota {dimensions = array<i32: 0>} : vector<8x768xi32>
    %c0_i32 = arith.constant 0 : i32
    %8 = vector.broadcast %c0_i32 : i32 to vector<8x768xi32>
    %9 = arith.cmpi eq, %7, %8 : vector<8x768xi32>
    %10 = vector.shape_cast %5 : vector<1x768xf32> to vector<1x768xf32>
    %11 = vector.broadcast %10 : vector<1x768xf32> to vector<8x768xf32>
    %12 = arith.select %9, %11, %6 : vector<8x768xi1>, vector<8x768xf32>
    %13 = arith.subf %1, %12 : vector<8x768xf32>
    %14 = arith.mulf %13, %13 : vector<8x768xf32>
    %15 = arith.subf %1, %3 : vector<8x768xf32>
    %16 = arith.mulf %15, %15 : vector<8x768xf32>
    %17 = vector.extract_strided_slice %14 {offsets = [0, 0], sizes = [8, 256], strides = [1, 1]} : vector<8x768xf32> to vector<8x256xf32>
    %18 = vector.extract_strided_slice %16 {offsets = [0, 0], sizes = [8, 256], strides = [1, 1]} : vector<8x768xf32> to vector<8x256xf32>
    %19 = vector.extract_strided_slice %14 {offsets = [0, 256], sizes = [8, 256], strides = [1, 1]} : vector<8x768xf32> to vector<8x256xf32>
    %20 = arith.addf %17, %19 : vector<8x256xf32>
    %21 = vector.extract_strided_slice %16 {offsets = [0, 256], sizes = [8, 256], strides = [1, 1]} : vector<8x768xf32> to vector<8x256xf32>
    %22 = arith.addf %18, %21 : vector<8x256xf32>
    %23 = vector.extract_strided_slice %14 {offsets = [0, 512], sizes = [8, 256], strides = [1, 1]} : vector<8x768xf32> to vector<8x256xf32>
    %24 = arith.addf %20, %23 : vector<8x256xf32>
    %25 = vector.extract_strided_slice %16 {offsets = [0, 512], sizes = [8, 256], strides = [1, 1]} : vector<8x768xf32> to vector<8x256xf32>
    %26 = arith.addf %22, %25 : vector<8x256xf32>
    %27 = arith.mulf %24, %26 : vector<8x256xf32>
    %cst = arith.constant dense<0.000000e+00> : vector<8xf32>
    %28 = vector.multi_reduction <add>, %27, %cst [1] : vector<8x256xf32> to vector<8xf32>
    %29 = vector.shape_cast %28 : vector<8xf32> to vector<8x1xf32>
    %cst_9 = arith.constant 0.00130208337 : f32
    %30 = vector.broadcast %cst_9 : f32 to vector<8x1xf32>
    %31 = arith.mulf %29, %30 : vector<8x1xf32>
    %c0_10 = arith.constant 0 : index
    %c0_11 = arith.constant 0 : index
    %c0_12 = arith.constant 0 : index
    %32 = vector.load %arg5[%c0_10, %c0_11, %c0_12] : memref<1x8x1xf32, #tpu.memory_space<vmem>>, vector<1x8x1xf32>
    %33 = vector.shape_cast %32 : vector<1x8x1xf32> to vector<8x1xf32>
    %34 = vector.shape_cast %31 : vector<8x1xf32> to vector<1x8x1xf32>
    tpu.vector_store %arg5[%c0_10, %c0_11, %c0_12], %34 {strides = array<i32>} : memref<1x8x1xf32, #tpu.memory_space<vmem>>, vector<1x8x1xf32>,
    return
  }
  func.func @transform_0(%arg0: i32, %arg1: i32) -> (i32, i32, i32) {
    %c0_i32 = arith.constant 0 : i32
    %c0_i32_0 = arith.constant 0 : i32
    return %arg0, %arg1, %c0_i32 : i32, i32, i32
  }
  func.func @transform_1(%arg0: i32, %arg1: i32) -> (i32, i32, i32) {
    %c0_i32 = arith.constant 0 : i32
    %c0_i32_0 = arith.constant 0 : i32
    return %arg0, %arg1, %c0_i32 : i32, i32, i32
  }
  func.func @transform_2(%arg0: i32, %arg1: i32) -> (i32, i32, i32, i32) {
    %c0_i32 = arith.constant 0 : i32
    %c0_i32_0 = arith.constant 0 : i32
    %c0_i32_1 = arith.constant 0 : i32
    return %arg0, %arg1, %c0_i32, %c0_i32_0 : i32, i32, i32, i32
  }
  func.func @transform_3(%arg0: i32, %arg1: i32) -> (i32, i32, i32) {
    %c0_i32 = arith.constant 0 : i32
    %c0_i32_0 = arith.constant 0 : i32
    return %arg0, %arg1, %c0_i32 : i32, i32, i32
  }
}

</mosaic_0001>

<bundles_post_ra>
// kernel: tpu_custom_call.1
= control target key start
LH: loop header
LB: loop body
LE: loop exit
PB: predicated region body
PF: predicated region fallthrough
CT: control target
= control target key end

     0   :  { %s886_s0 = inlined_call_operand.hbm [shape: f32[2,8,768], index: 0, kind: input, shape index: {}]   ;;  %s887_s1 = inlined_call_operand.hbm [shape: f32[2,8,768], index: 1, kind: input, shape index: {}]   ;;  %s888_s2 = inlined_call_operand.hbm [shape: f32[2,1,1,768], index: 2, kind: input, shape index: {}]   ;;  %s889_s3 = inlined_call_operand.vmem [shape: f32[2,8,1], index: 3, kind: output, shape index: {}]  }
   0x1   :  { %891 = sst [smem:[#allocation9_spill]] %s887_s1 }
   0x2   :  { %8 = vsyncpa [#allocation3], 0 }
   0x3   :  { %10 = vsyncpa [#allocation3 + $0x1], 0 }
   0x4   :  { %11 = vsyncpa [#allocation5], 0 }
   0x5   :  { %13 = vsyncpa [#allocation5 + $0x1], 0  ;;  %s761_s12 = smov 0   ;;  %s763_s13 = smov 0  }
   0x6   :  { %s765_s14 = smov 0   ;;  %s767_s15 = smov 0  }
   0x7   :  { %s769_s16 = smov 0   ;;  %s771_s17 = smov 0  }
   0x8 LB: > { %s890_s18 = sadd.s32 4294967295, %s739_s17   ;;  %s31_s19 = sadd.s32 1, %s735_s16  ;;  %s739_s17 = sphi %s771_s17, %s19_s17   ;;  %s735_s16 = sphi %s769_s16, %s901_s16   ;;  %s731_s15 = sphi %s767_s15, %s900_s15   ;;  %s727_s14 = sphi %s765_s14, %s899_s14   ;;  %s723_s13 = sphi %s763_s13, %s898_s13   ;;  %s719_s12 = sphi %s761_s12, %s897_s12  }
   0x9   : > { %p33_p0 = scmp.ge.s32.totalorder %s31_s19, 2  ;;  %s40_s20 = sadd.s32 1, %s727_s14 }
   0xa   : > { %p47_p1 = scmp.ne.s32.totalorder %s727_s14, %s723_s13  ;;  %p48_p2 = scmp.eq.s32.totalorder %s739_s17, 0 }
   0xb   : > { %s903_s19 = smov (%p33_p0, %s31_s19), 0  ;;  %p53_p4 = scmp.ne.s32.totalorder %s723_s13, %s719_s12 }
   0xc   : > { %p49_p3 = por %p48_p2, %p47_p1  ;;  %s35_s21 = ssub.s32 %s735_s16, %s903_s19 }
   0xd   : > { %p54_p5 = scmp.eq.s32.totalorder %s890_s18, 0  ;;  %p38_p6 = scmp.eq.s32.totalorder %s35_s21, 0 }
   0xe   : > { %p546_p8 = scmp.lt.s32.totalorder %s739_s17, 2  ;;  %s161_s24 = sand.u32 1, %s727_s14  }
   0xf   : > { %p802_p7 = por %p54_p5, %p53_p4  ;;  %s523_s25 = smul.u32 48, %s735_s16 }
  0x10   : > { %s808_s23 = scalar_select %p38_p6, %s727_s14, %s40_s20  }
  0x11   : > { %s522_s26 = smul.u32 48, %s161_s24  ;;  %p812_p9 = pnand %p546_p8, %p49_p3 }
  0x12   : > { %s183_s28 = sand.u32 1, %s739_s17   ;;  %s894_s1 = sld [smem:[#allocation9_spill]] }
  0x13   : > { %s187_s6 = scalar_lea.vmem [#allocation4], %s522_s26  ;;  %p518_p10 = scmp.ge.s32.totalorder %s739_s17, 1 }
  0x14   : > { %s198_s7 = sshll.u32 %s187_s6, 4  ;;  %s184_s8 = scalar_lea.sflag [#allocation5], %s183_s28  ;;  %s199_s7 = int_to_ptr.vmem [resolvable:$true] %s198_s7 }
  0x15   : > { %p224_p11 = scmp.lt.s32.totalorder %s739_s17, 3  ;;  %s172_s12 = scalar_lea.hbm %s886_s0, %s523_s25 }
  0x16   : > { %s165_s20 = scalar_lea.vmem [#allocation2], %s522_s26  ;;  %s174_s29 = sshll.u32 %s172_s12, 4  ;;  %s175_s29 = int_to_ptr.hbm [resolvable:$true] %s174_s29 }
  0x17   : > { %p824_p12 = pnand %p518_p10, %p224_p11  ;;  %s176_s21 = sshll.u32 %s165_s20, 4  ;;  %s177_s21 = int_to_ptr.vmem [resolvable:$true] %s176_s21 }
  0x18   : > { %s194_s4 = scalar_lea.hbm %s894_s1, %s523_s25  ;;  %s526_s30 = smul.u32 6, %s161_s24 }
  0x19   : > { %s196_s5 = sshll.u32 %s194_s4, 4  ;;  %s162_s4 = scalar_lea.sflag [#allocation3], %s161_s24  ;;  %s197_s5 = int_to_ptr.hbm [resolvable:$true] %s196_s5 }
  0x1a   : > { %542 = dma.hbm_to_vmem [thread:$0]  (!%p812_p9), %s197_s5, 768, %s199_s7, %s184_s8  }
  0x1b   : > { %539 = dma.hbm_to_vmem [thread:$0]  (!%p812_p9), %s175_s29, 768, %s177_s21, %s162_s4  }
  0x1c   : > { %s527_s28 = smul.u32 6, %s735_s16  ;;  %s209_s5 = scalar_lea.vmem [#allocation6], %s526_s30 }
  0x1d   : > { %s219_s6 = sshll.u32 %s209_s5, 4  ;;  %228 = sbr.rel (%p824_p12) target bundleno = 179 (0xb3), region = 32  ;;  %s220_s6 = int_to_ptr.vmem [resolvable:$true] %s219_s6 }
  0x1e   : > { %s215_s1 = scalar_lea.hbm %s888_s2, %s527_s28  ;;  %s842_s24 = sand.u32 (!%p824_p12), 1, %s723_s13  }
  0x1f   : > { %s217_s10 = sshll.u32 %s215_s1, 4  ;;  %s528_s25 = smul.u32 (!%p824_p12), 48, %s842_s24  ;;  %s218_s10 = int_to_ptr.hbm [resolvable:$true] %s217_s10 }
  0x20   : > { %545 = dma.hbm_to_vmem [thread:$0]  (!%p812_p9), %s218_s10, 96, %s220_s6, %s184_s8  }
  0x21   : > { %s231_s26 = scalar_lea.sflag (!%p824_p12), [#allocation3], %s842_s24  ;;  %s234_s11 = scalar_lea.vmem (!%p824_p12), [#allocation2], %s528_s25 }
  0x22   : > { %710 = dma.done.wait (%p802_p7), %s231_s26, 768  }
  0x23   : > { %712 = vsyncadd (%p802_p7), %s231_s26, 4294966528  ;;  %s896_s1 = sadd.s32 4294967295, %s739_s17   ;;  %s244_s8 = scalar_lea.vmem [#allocation4], %s528_s25 }
  0x24   : > { %s240_s18 = sand.u32 1, %s896_s1  }
  0x25   : > { %s241_s27 = scalar_lea.sflag [#allocation5], %s240_s18 }
  0x26   : > { %714 = dma.done.wait (%p802_p7), %s241_s27, 864  }
  0x27   : > { %716 = vsyncadd (%p802_p7), %s241_s27, 4294966432  ;;  %v316_v0 = vlaneseq  ;;  %s529_s9 = smul.u32 6, %s842_s24  ;;  %v297_v2 = vld [vmem:[%s234_s11] sm:$0xff]  ;;  %v298_v3 = vld [vmem:[%s234_s11 + $0x8] sm:$0xff]  ;;  %p290_p13 = scmp.lt.s32.totalorder %s731_s15, 1  ;;  %vm376_vm1 = vcmask 7168  }
  0x28   : > { %v299_v4 = vld [vmem:[%s234_s11 + $0x10] sm:$0xff]  ;;  %v300_v5 = vld [vmem:[%s234_s11 + $0x18] sm:$0xff]  ;;  %v301_v6 = vld [vmem:[%s234_s11 + $0x20] sm:$0xff]  ;;  %v310_v8 = vrot.slane %v297_v2, 7  ;;  %v311_v12 = vrot.slane %v298_v3, 7 }
  0x29   : > { %v317_v1 = vshrl.u32 %v316_v0, 7  ;;  %v302_v7 = vld [vmem:[%s234_s11 + $0x28] sm:$0xff]  ;;  %v303_v9 = vld [vmem:[%s244_s8] sm:$0xff]  ;;  %v305_v11 = vld [vmem:[%s244_s8 + $0x10] sm:$0xff]  ;;  %v312_v13 = vrot.slane %v299_v4, 7  ;;  %v313_v14 = vrot.slane %v300_v5, 7 }
  0x2a   : > { %v304_v10 = vld [vmem:[%s244_s8 + $0x8] sm:$0xff]  ;;  %v306_v15 = vld [vmem:[%s244_s8 + $0x18] sm:$0xff]  ;;  %v307_v16 = vld [vmem:[%s244_s8 + $0x20] sm:$0xff]  ;;  %v314_v18 = vrot.slane %v301_v6, 7  ;;  %v315_v19 = vrot.slane %v302_v7, 7  ;;  %v350_v20 = vsub.f32 %v297_v2, %v303_v9  ;;  %s254_s22 = scalar_lea.vmem [#allocation6], %s529_s9  ;;  %v352_v23 = vsub.f32 %v299_v4, %v305_v11 }
  0x2b   : > { %vm318_vm0 = vcmp.eq.s32.totalorder %v317_v1, 0  ;;  %v308_v17 = vld [vmem:[%s244_s8 + $0x28] sm:$0xff]  ;;  %v351_v21 = vsub.f32 %v298_v3, %v304_v10  ;;  %v309_v22 = vld [vmem:[%s254_s22] sm:$0x3f]  ;;  %v353_v24 = vsub.f32 %v300_v5, %v306_v15  ;;  %v354_v25 = vsub.f32 %v301_v6, %v307_v16  ;;  %s905_s15 = smov (!%p290_p13, %s731_s15), 1 }
  0x2c   : > { %v355_v26 = vsub.f32 %v302_v7, %v308_v17  ;;  %v320_v27 = vperm.slane %v309_v22, 0  ;;  %v321_v28 = vperm.slane %v309_v22, 1  ;;  %v322_v29 = vperm.slane %v309_v22, 2  ;;  %s519_s12 = sshll.u32 %s905_s15, 3 }
  0x2d   : > { %v323_v30 = vperm.slane %v309_v22, 3  ;;  %v324_v31 = vperm.slane %v309_v22, 4  ;;  %v325_v32 = vperm.slane %v309_v22, 5  ;;  %v356_v33 = vmul.f32 %v350_v20, %v350_v20  ;;  %s296_s29 = scalar_lea.vmem %s889_s3, %s519_s12 }
  0x2e   : > { %v357_v34 = vmul.f32 %v351_v21, %v351_v21  ;;  %v332_v35 = vsel %vm318_vm0, %v320_v27, %v310_v8  ;;  %v333_v36 = vsel %vm318_vm0, %v321_v28, %v311_v12  ;;  %v334_v37 = vsel %vm318_vm0, %v322_v29, %v312_v13 }
  0x2f   : > { %v335_v38 = vsel %vm318_vm0, %v323_v30, %v313_v14  ;;  %v336_v39 = vsel %vm318_vm0, %v324_v31, %v314_v18  ;;  %v337_v40 = vsel %vm318_vm0, %v325_v32, %v315_v19  ;;  %v338_v41 = vsub.f32 %v297_v2, %v332_v35 }
  0x30   : > { %v339_v42 = vsub.f32 %v298_v3, %v333_v36  ;;  %v340_v43 = vsub.f32 %v299_v4, %v334_v37  ;;  %v341_v44 = vsub.f32 %v300_v5, %v335_v38  ;;  %v342_v45 = vsub.f32 %v301_v6, %v336_v39 }
  0x31   : > { %v343_v46 = vsub.f32 %v302_v7, %v337_v40  ;;  %v344_v47 = vmul.f32 %v338_v41, %v338_v41  ;;  %v358_v49 = vmul.f32 %v352_v23, %v352_v23  ;;  %v359_v50 = vmul.f32 %v353_v24, %v353_v24 }
  0x32   : > { %v345_v48 = vmul.f32 %v339_v42, %v339_v42  ;;  %v346_v51 = vmul.f32 %v340_v43, %v340_v43  ;;  %v347_v52 = vmul.f32 %v341_v44, %v341_v44  ;;  %v348_v53 = vmul.f32 %v342_v45, %v342_v45 }
  0x33   : > { %v349_v54 = vmul.f32 %v343_v46, %v343_v46  ;;  %v360_v55 = vmul.f32 %v354_v25, %v354_v25  ;;  %v361_v56 = vmul.f32 %v355_v26, %v355_v26  ;;  %v364_v57 = vadd.f32 %v358_v49, %v356_v33 }
  0x34   : > { %v365_v58 = vadd.f32 %v359_v50, %v357_v34  ;;  %v362_v59 = vadd.f32 %v346_v51, %v344_v47  ;;  %v363_v60 = vadd.f32 %v347_v52, %v345_v48 }
  0x35   : > { %v368_v61 = vadd.f32 %v364_v57, %v360_v55 }
  0x36   : > { %v369_v62 = vadd.f32 %v365_v58, %v361_v56  ;;  %v366_v63 = vadd.f32 %v362_v59, %v348_v53  ;;  %v367_v0 = vadd.f32 %v363_v60, %v349_v54 }
  0x38   : > { %v370_v1 = vmul.f32 %v368_v61, %v366_v63  ;;  %v371_v2 = vmul.f32 %v369_v62, %v367_v0 }
  0x3a   : > { %v372_v3 = vadd.f32 %v371_v2, %v370_v1 }
  0x3c   : > { %373 = vadd.xlane.f32.xlu0 %v372_v3 }
  0xaf   : > { %v374_v4 = vpop.xlane.xlu0 %373 }
  0xb0   : > { %v375_v5 = vmul.f32 0.0013020834, %v374_v4 }
  0xb2   : > { %377 = vst.msk [vmem:[%s296_s29] sm:$0xff] %vm376_vm1, %v375_v5 }
  0xb3 PF: > { %s19_s17 = sadd.s32 1, %s739_s17   ;;  %s897_s12 = smov %s723_s13 }
  0xb4   : > { %p16_p0 = scmp.ge.s32.totalorder %s19_s17, 4   ;;  %s898_s13 = smov %s727_s14 }
  0xb5   : > { %s899_s14 = smov %s808_s23  ;;  %s900_s15 = smov %s735_s16 }
  0xb6   : > { %s901_s16 = smov %s903_s19  ;;  %18 = sbr.rel (!%p16_p0) target bundleno = 8 (0x8), region = 96 }
  0xbb   :  { %403 = vsyncpa [#allocation3], 1 }
  0xbc   :  { %405 = vsyncpa [#allocation3 + $0x1], 1 }
  0xbd   :  { %406 = vsyncpa [#allocation5], 1 }
  0xbe   :  { %408 = vsyncpa [#allocation5 + $0x1], 1 }

</bundles_post_ra>
